<compile_context>
chip_gen: v7x
topology: tpu7x:2x2x1
jax: 0.10.0
libtpu: 0.0.40
codegen_flags: <defaults>
</compile_context>

<pallas_src>
import functools
import inspect

import jax
import jax.numpy as jnp
from jax.experimental import pallas as pl
from jax.experimental.pallas import tpu as pltpu


# ---------------------------------------------------------------------------
# Kernels
# ---------------------------------------------------------------------------

def _linear2d_bias_kernel(x_ref, w_ref, b_ref, o_ref):
    """Single-pass (whole-K) tile: o = x @ W_t + b. No scratch, no branches."""
    acc = jnp.dot(x_ref[...], w_ref[...], preferred_element_type=jnp.float32)
    o_ref[...] = (acc + b_ref[...].astype(jnp.float32)).astype(o_ref.dtype)


def _linear2d_nobias_kernel(x_ref, w_ref, o_ref):
    acc = jnp.dot(x_ref[...], w_ref[...], preferred_element_type=jnp.float32)
    o_ref[...] = acc.astype(o_ref.dtype)


def _linear3d_bias_kernel(x_ref, w_ref, b_ref, o_ref, acc_ref):
    """K-tiled path: f32 accumulator resident across the (last) K grid axis."""
    k = pl.program_id(2)

    @pl.when(k == 0)
    def _():
        # Fold bias into the accumulator init -> no extra add in the epilogue.
        acc_ref[...] = jnp.broadcast_to(
            b_ref[...].astype(jnp.float32), acc_ref.shape)

    acc_ref[...] += jnp.dot(x_ref[...], w_ref[...],
                            preferred_element_type=jnp.float32)

    @pl.when(k == pl.num_programs(2) - 1)
    def _():
        o_ref[...] = acc_ref[...].astype(o_ref.dtype)


def _linear3d_nobias_kernel(x_ref, w_ref, o_ref, acc_ref):
    k = pl.program_id(2)

    @pl.when(k == 0)
    def _():
        acc_ref[...] = jnp.zeros_like(acc_ref)

    acc_ref[...] += jnp.dot(x_ref[...], w_ref[...],
                            preferred_element_type=jnp.float32)

    @pl.when(k == pl.num_programs(2) - 1)
    def _():
        o_ref[...] = acc_ref[...].astype(o_ref.dtype)


# ---------------------------------------------------------------------------
# Tile / VMEM policy helpers
# ---------------------------------------------------------------------------

def _round_up(a, b):
    return (a + b - 1) // b * b


def _divisor_tile(total, cap, align):
    """Largest multiple of `align` that divides `total` and is <= cap.

    `total` must itself be a multiple of `align` (so `align` always works).
    """
    cap = max(align, min(cap, total))
    d = (cap // align) * align
    while d > align and total % d != 0:
        d -= align
    return d


def _vmem_budget_bytes():
    """Generation-aware scoped-VMEM request (bytes)."""
    phys = 64 * 1024 * 1024  # conservative default: v7x has 64 MiB per TC
    try:
        info = pltpu.get_tpu_info()
        for name in ("vmem_capacity_bytes", "vmem_bytes", "vmem_size_bytes"):
            val = getattr(info, name, None)
            if val:
                phys = int(val)
                break
    except Exception:
        pass
    # Leave headroom for compiler-internal scratch: ~100 MiB on the 128 MiB
    # chips (v5e / v6e), ~48 MiB on v7x.
    return max(32 * 1024 * 1024, min(phys * 3 // 4, 100 * 1024 * 1024))


def _footprint_bytes(tm, tn, tk, in_bytes, out_bytes, use_acc, has_bias,
                     w_buffers=2):
    b = 2 * tm * tk * in_bytes            # x tiles (double buffered)
    b += w_buffers * tk * tn * in_bytes   # weight tiles
    b += 2 * tm * tn * out_bytes          # output tiles (double buffered)
    if use_acc:
        b += tm * tn * 4                  # f32 accumulator scratch
    if has_bias:
        b += 2 * tn * 4
    return b


def _select_tiles(M, N_a, K_a, tm, tn, tk, budget, in_bytes, out_bytes,
                  has_bias, single_pass_k):
    """Returns (tm_e, tn_e, tk_e, use_acc)."""
    M16 = _round_up(M, 16)  # bf16 packs (16,128) per vreg
    # Weight reuse first: whole-M tile when M fits the requested tm budget, so
    # the (usually dominant) weight operand streams from HBM exactly once.
    tm_e = M16 if M16 <= tm else max(16, (tm // 16) * 16)
    tn_e = _divisor_tile(N_a, tn, 128)

    # Whole-K single pass (no reduction grid axis / accumulator) when it fits.
    if single_pass_k and _footprint_bytes(tm_e, tn_e, K_a, in_bytes, out_bytes,
                                          False, has_bias) <= budget:
        return tm_e, tn_e, K_a, False

    tk_e = _divisor_tile(K_a, tk, 128)
    # Shrink until the double-buffered working set fits: tk first (does not
    # change HBM re-read counts), then tn, then tm (tm drives weight re-reads).
    while _footprint_bytes(tm_e, tn_e, tk_e, in_bytes, out_bytes,
                           tk_e < K_a, has_bias) > budget:
        if tk_e > 512:
            tk_e = _divisor_tile(K_a, tk_e // 2, 128)
        elif tn_e > 256:
            tn_e = _divisor_tile(N_a, tn_e // 2, 128)
        elif tm_e > 128:
            tm_e = max(16, ((tm_e // 2) // 16) * 16)
        elif tk_e > 128:
            tk_e = _divisor_tile(K_a, tk_e // 2, 128)
        elif tn_e > 128:
            tn_e = 128
        elif tm_e > 16:
            tm_e = max(16, ((tm_e // 2) // 16) * 16)
        else:
            break
    return tm_e, tn_e, tk_e, tk_e < K_a


def _supports_pipeline_mode():
    try:
        return (hasattr(pl, "Buffered")
                and "pipeline_mode" in inspect.signature(pl.BlockSpec).parameters)
    except Exception:
        return False


def _weight_spec(tk_e, tn_e, index_map, deep):
    """Weight BlockSpec, optionally with 3-deep buffering on the weight stream."""
    if deep and _supports_pipeline_mode():
        try:
            return pl.BlockSpec((tk_e, tn_e), index_map,
                                pipeline_mode=pl.Buffered(3))
        except Exception:
            pass
    return pl.BlockSpec((tk_e, tn_e), index_map)


# ---------------------------------------------------------------------------
# Wrapper
# ---------------------------------------------------------------------------

@functools.partial(
    jax.jit,
    static_argnames=("out_features", "tm", "tn", "tk", "single_pass_k"))
def linear_pallas(x, weight_t, bias=None, *, out_features=None,
                  tm=512, tn=1024, tk=2048, single_pass_k=True):
    """y = (x @ weight_t + bias)[..., :out_features].

    x:        (..., K)   activations (bf16)
    weight_t: (Kw, Nw)   weight pre-transposed to (in, out) layout; may be
                         zero-padded to multiples of 128/256 (done once in
                         LinearJax.__init__), Kw >= K.
    bias:     (Nb,) f32  (zero-padded alongside the weight) or None
    """
    *lead, K = x.shape
    Kw, Nw = weight_t.shape
    assert Kw >= K, (Kw, K)
    N = Nw if out_features is None else out_features
    assert N <= Nw, (N, Nw)

    M = 1
    for d in lead:
        M *= d
    x2 = x.reshape(M, K)

    in_bytes = jnp.dtype(weight_t.dtype).itemsize
    out_bytes = jnp.dtype(x.dtype).itemsize
    has_bias = bias is not None

    # Hardware-aligned working dims (the weight is normally already padded;
    # if not, a one-off per-call pad is used as a fallback).
    K_a = _round_up(Kw, 128)
    N_a = _round_up(Nw, 128)

    vmem_limit = _vmem_budget_bytes()
    budget = int(vmem_limit * 0.85)   # headroom under the scoped limit

    tm_e, tn_e, tk_e, use_acc = _select_tiles(
        M, N_a, K_a, tm, tn, tk, budget, in_bytes, out_bytes, has_bias,
        single_pass_k)

    Mp = _round_up(M, tm_e)
    grid_m = Mp // tm_e
    grid_n = N_a // tn_e
    grid_k = K_a // tk_e

    # Give both v7x TensorCores something to do: guarantee >=2 parallel blocks
    # for small-M (decode) shapes by splitting N. Harmless on 1-TC chips.
    if grid_m * grid_n == 1 and N_a >= 256:
        tn_e = _divisor_tile(N_a, N_a // 2, 128)
        grid_n = N_a // tn_e

    # Per-call padding: only the (cheap) activation side; weight/bias are
    # pre-padded at parameter setup and tiles are snapped to divide N_a/K_a.
    if (Mp, K_a) != (M, K):
        x2 = jnp.pad(x2, ((0, Mp - M), (0, K_a - K)))
    wt = weight_t
    if (K_a, N_a) != (Kw, Nw):
        wt = jnp.pad(wt, ((0, K_a - Kw), (0, N_a - Nw)))   # fallback only
    if has_bias:
        nb = bias.shape[0]
        b2 = bias.astype(jnp.float32).reshape(1, nb)
        if N_a != nb:
            b2 = jnp.pad(b2, ((0, 0), (0, N_a - nb)))      # fallback only

    # Deeper weight-stream buffering for small-M, many-weight-tile shapes
    # (per-tile MXU time shorter than the weight DMA), if it still fits VMEM.
    deep_w = (grid_m == 1 and grid_n * grid_k >= 3 and
              _footprint_bytes(tm_e, tn_e, tk_e, in_bytes, out_bytes,
                               use_acc, has_bias, w_buffers=3) <= budget)

    # True streamed HBM traffic: x re-read grid_n times, W re-read grid_m times.
    cost = pl.CostEstimate(
        flops=2 * M * N * K,
        transcendentals=0,
        bytes_accessed=(Mp * K_a * in_bytes * grid_n
                        + K_a * N_a * in_bytes * grid_m
                        + Mp * N_a * out_bytes
                        + (N_a * 4 if has_bias else 0)),
    )

    if use_acc:
        grid = (grid_m, grid_n, grid_k)
        dims = ("parallel", "parallel", "arbitrary")
        x_spec = pl.BlockSpec((tm_e, tk_e), lambda i, j, k: (i, k))
        w_spec = _weight_spec(tk_e, tn_e, lambda i, j, k: (k, j), deep_w)
        o_spec = pl.BlockSpec((tm_e, tn_e), lambda i, j, k: (i, j))
        scratch = [pltpu.VMEM((tm_e, tn_e), jnp.float32)]
        if has_bias:
            kernel = _linear3d_bias_kernel
            in_specs = [x_spec, w_spec,
                        pl.BlockSpec((1, tn_e), lambda i, j, k: (0, j))]
            args = (x2, wt, b2)
        else:
            kernel = _linear3d_nobias_kernel
            in_specs = [x_spec, w_spec]
            args = (x2, wt)
    else:
        # Whole-K single pass: no reduction axis, no accumulator scratch.
        grid = (grid_m, grid_n)
        dims = ("parallel", "parallel")
        x_spec = pl.BlockSpec((tm_e, tk_e), lambda i, j: (i, 0))
        w_spec = _weight_spec(tk_e, tn_e, lambda i, j: (0, j), deep_w)
        o_spec = pl.BlockSpec((tm_e, tn_e), lambda i, j: (i, j))
        scratch = []
        if has_bias:
            kernel = _linear2d_bias_kernel
            in_specs = [x_spec, w_spec,
                        pl.BlockSpec((1, tn_e), lambda i, j: (0, j))]
            args = (x2, wt, b2)
        else:
            kernel = _linear2d_nobias_kernel
            in_specs = [x_spec, w_spec]
            args = (x2, wt)

    out = pl.pallas_call(
        kernel,
        out_shape=jax.ShapeDtypeStruct((Mp, N_a), x.dtype),
        grid_spec=pltpu.PrefetchScalarGridSpec(
            num_scalar_prefetch=0,
            grid=grid,
            in_specs=in_specs,
            out_specs=o_spec,
            scratch_shapes=scratch),
        compiler_params=pltpu.CompilerParams(
            dimension_semantics=dims,
            vmem_limit_bytes=int(vmem_limit)),
        cost_estimate=cost,
    )(*args)

    if (Mp, N_a) != (M, N):
        out = out[:M, :N]
    return out.reshape(*lead, N)


# ---------------------------------------------------------------------------
# Module mirror
# ---------------------------------------------------------------------------

class LinearJax:
    """Mirror of the PyTorch `Linear` module (bf16 weights -> plain F.linear path)."""

    dtype = jnp.bfloat16

    def __init__(self, in_features, out_features, bias=False, *, key=None):
        self.in_features = in_features
        self.out_features = out_features
        kw, kb = jax.random.split(key)
        # nn.Parameter(torch.empty(...)) is uninitialized in the reference;
        # use a small deterministic normal init here.
        self.weight = (
            jax.random.normal(kw, (out_features, in_features), jnp.float32) * 0.02
        ).astype(self.dtype)
        # One-time transpose to (K, N) and one-time zero-pad to MXU-friendly
        # multiples of 256, so the kernel never transposes or pads the weight
        # per call. Padding is numerically inert: padded K columns of x are
        # zero, padded N columns are sliced off the output.
        k_pad = _round_up(in_features, 256)
        n_pad = _round_up(out_features, 256)
        wt = jnp.asarray(self.weight.T)
        self.weight_t = jnp.pad(
            wt, ((0, k_pad - in_features), (0, n_pad - out_features)))
        if bias:
            b = jax.random.normal(kb, (out_features,), jnp.float32) * 0.02
            self.bias = b
            self.bias_padded = jnp.pad(b, (0, n_pad - out_features))
        else:
            self.bias = None
            self.bias_padded = None
        # TODO(synk): fp8 weight path (weight.element_size() == 1) with
        # block-wise scales is not implemented.

    def __call__(self, x):
        return linear_pallas(x, self.weight_t, self.bias_padded,
                             out_features=self.out_features)


# ---------------------------------------------------------------------------
# Self-test
# ---------------------------------------------------------------------------

if __name__ == "__main__":
    key = jax.random.PRNGKey(0)
    k_x, k_p1, k_p2 = jax.random.split(key, 3)

    batch, seq = 2, 8
    in_features, out_features = 256, 192  # non-multiple-of-256 N exercises padding

    x = jax.random.normal(
        k_x, (batch, seq, in_features), jnp.float32).astype(jnp.bfloat16)

    layer_b = LinearJax(in_features, out_features, bias=True, key=k_p1)
    layer_nb = LinearJax(in_features, out_features, bias=False, key=k_p2)

    ref_b = (
        jnp.einsum("bsk,nk->bsn", x.astype(jnp.float32),
                   layer_b.weight.astype(jnp.float32)) + layer_b.bias
    ).astype(jnp.bfloat16)
    ref_nb = jnp.einsum("bsk,nk->bsn", x.astype(jnp.float32),
                        layer_nb.weight.astype(jnp.float32)).astype(jnp.bfloat16)

    # Default path: whole-K single-pass kernel (no reduction grid axis).
    y_b = jax.block_until_ready(layer_b(x))
    y_nb = jax.block_until_ready(layer_nb(x))

    # K-tiled accumulator path, forced at small shapes for compile coverage.
    y_b3 = jax.block_until_ready(
        linear_pallas(x, layer_b.weight_t, layer_b.bias_padded,
                      out_features=out_features, tk=128, single_pass_k=False))
    y_nb3 = jax.block_until_ready(
        linear_pallas(x, layer_nb.weight_t, None,
                      out_features=out_features, tk=128, single_pass_k=False))

    for y, ref in ((y_b, ref_b), (y_nb, ref_nb), (y_b3, ref_b), (y_nb3, ref_nb)):
        assert y.shape == (batch, seq, out_features), y.shape
        assert y.dtype == jnp.bfloat16, y.dtype
        assert jnp.allclose(y.astype(jnp.float32), ref.astype(jnp.float32),
                            atol=2e-2, rtol=2e-2)

    print("KERNEL_OK")
</pallas_src>

<mosaic_0001>
module attributes {stable_mosaic.version = 11 : i64} {
  func.func @_linear2d_bias_kernel(%arg0: i32, %arg1: i32, %arg2: memref<16x256xbf16, #tpu.memory_space<vmem>>, %arg3: memref<256x128xbf16, #tpu.memory_space<vmem>>, %arg4: memref<1x128xf32, #tpu.memory_space<vmem>>, %arg5: memref<16x128xbf16, #tpu.memory_space<vmem>>) attributes {dimension_semantics = [#tpu.dimension_semantics<parallel>, #tpu.dimension_semantics<parallel>], iteration_bounds = array<i64: 1, 2>, scalar_prefetch = 0 : i64, scratch_operands = 0 : i64, tpu.core_type = #tpu.core_type<tc>, window_params = [{transform_indices = @transform_0, window_bounds = array<i64: 16, 256>}, {transform_indices = @transform_1, window_bounds = array<i64: 256, 128>}, {transform_indices = @transform_2, window_bounds = array<i64: 1, 128>}, {transform_indices = @transform_3, window_bounds = array<i64: 16, 128>}]} {
    %c0 = arith.constant 0 : index
    %c0_0 = arith.constant 0 : index
    %0 = vector.load %arg2[%c0, %c0_0] : memref<16x256xbf16, #tpu.memory_space<vmem>>, vector<16x256xbf16>
    %c0_1 = arith.constant 0 : index
    %c0_2 = arith.constant 0 : index
    %1 = vector.load %arg3[%c0_1, %c0_2] : memref<256x128xbf16, #tpu.memory_space<vmem>>, vector<256x128xbf16>
    %cst = arith.constant dense<0.000000e+00> : vector<16x128xf32>
    %2 = tpu.matmul %0, %1, %cst {dimension_numbers = #tpu.dot_dimension_numbers<[1], [0], [0], [1], [0, 0, 1, 1], [], []>} : vector<16x256xbf16>, vector<256x128xbf16>, vector<16x128xf32> -> vector<16x128xf32>
    %c0_3 = arith.constant 0 : index
    %c0_4 = arith.constant 0 : index
    %3 = vector.load %arg4[%c0_3, %c0_4] : memref<1x128xf32, #tpu.memory_space<vmem>>, vector<1x128xf32>
    %4 = vector.broadcast %3 : vector<1x128xf32> to vector<16x128xf32>
    %5 = arith.addf %2, %4 : vector<16x128xf32>
    %6 = arith.truncf %5 : vector<16x128xf32> to vector<16x128xbf16>
    %c0_5 = arith.constant 0 : index
    %c0_6 = arith.constant 0 : index
    %7 = vector.load %arg5[%c0_5, %c0_6] : memref<16x128xbf16, #tpu.memory_space<vmem>>, vector<16x128xbf16>
    tpu.vector_store %arg5[%c0_5, %c0_6], %6 {strides = array<i32>} : memref<16x128xbf16, #tpu.memory_space<vmem>>, vector<16x128xbf16>,
    return
  }
  func.func @transform_0(%arg0: i32, %arg1: i32) -> (i32, i32) {
    %c0_i32 = arith.constant 0 : i32
    %c0_i32_0 = arith.constant 0 : i32
    return %arg0, %c0_i32 : i32, i32
  }
  func.func @transform_1(%arg0: i32, %arg1: i32) -> (i32, i32) {
    %c0_i32 = arith.constant 0 : i32
    %c0_i32_0 = arith.constant 0 : i32
    return %c0_i32, %arg1 : i32, i32
  }
  func.func @transform_2(%arg0: i32, %arg1: i32) -> (i32, i32) {
    %c0_i32 = arith.constant 0 : i32
    %c0_i32_0 = arith.constant 0 : i32
    return %c0_i32, %arg1 : i32, i32
  }
  func.func @transform_3(%arg0: i32, %arg1: i32) -> (i32, i32) {
    %c0_i32 = arith.constant 0 : i32
    return %arg0, %arg1 : i32, i32
  }
}

</mosaic_0001>

<bundles_post_ra>
// kernel: linear_pallas.1
= control target key start
LH: loop header
LB: loop body
LE: loop exit
PB: predicated region body
PF: predicated region fallthrough
CT: control target
= control target key end

     0   :  { %8 = vsyncpa [#allocation3], 0  ;;  %s1088_s0 = inlined_call_operand.hbm [shape: bf16[16,256], index: 0, kind: input, shape index: {}]   ;;  %s1089_s1 = inlined_call_operand.hbm [shape: bf16[256,256], index: 1, kind: input, shape index: {}]   ;;  %s1090_s2 = inlined_call_operand.vmem [shape: f32[1,256], index: 2, kind: input, shape index: {}]   ;;  %s1091_s3 = inlined_call_operand.vmem [shape: bf16[16,256], index: 3, kind: output, shape index: {}]  }
   0x1   :  { %9 = vsyncpa [#allocation5], 0 }
   0x2   :  { %11 = vsyncpa [#allocation5 + $0x1], 0  ;;  %s881_s12 = smov 0   ;;  %s883_s13 = smov 0  }
   0x3   :  { %s885_s14 = smov 0   ;;  %s887_s15 = smov 0  }
   0x4   :  { %s889_s16 = smov 0   ;;  %s891_s17 = smov 0  }
   0x5 LB: > { %s587_s18 = sadd.s32 4294967295, %s853_s17   ;;  %p69_p0 = scmp.ne.s32.totalorder %s841_s14, %s837_s13  ;;  %s853_s17 = sphi %s891_s17, %s17_s17   ;;  %s849_s16 = sphi %s889_s16, %s1114_s16   ;;  %s845_s15 = sphi %s887_s15, %s1113_s15   ;;  %s841_s14 = sphi %s885_s14, %s1112_s14   ;;  %s837_s13 = sphi %s883_s13, %s1111_s13   ;;  %s833_s12 = sphi %s881_s12, %s1110_s12  }
   0x6   : > { %p70_p1 = scmp.eq.s32.totalorder %s853_s17, 0  ;;  %p75_p2 = scmp.ne.s32.totalorder %s837_s13, %s833_s12 }
   0x7   : > { %p914_p3 = scmp.eq.s32.totalorder %s587_s18, 0  ;;  %p127_p4 = scmp.eq.s32.totalorder %s587_s18, 1 }
   0x8   : > { %p71_p5 = por %p70_p1, %p69_p0  ;;  %p589_p6 = scmp.ge.s32.totalorder %s853_s17, 1 }
   0x9   : > { %s1097_s19 = scalar_select %p914_p3, 1, 0 }
   0xa   : > { %p921_p7 = por %p914_p3, %p75_p2  ;;  %p925_p8 = por %p127_p4, %p69_p0 }
   0xb   : > { %p140_p9 = scmp.lt.s32.totalorder %s853_s17, 3  ;;  %s855_s23 = smov [#allocation2]  }
   0xc   : > { %s1098_s20 = scalar_select %p921_p7, 1, 0 }
   0xd   : > { %s1099_s21 = scalar_select %p925_p8, 1, 0 }
   0xe   : > { %p930_p10 = pnand %p589_p6, %p140_p9  ;;  %s156_s24 = sshll.u32 %s855_s23, 4  ;;  %s934_s24 = int_to_ptr.vmem [resolvable:$true] %s156_s24 }
   0xf   : > { %p667_p12 = scmp.lt.s32.totalorder %s853_s17, 2  ;;  %s26_s27 = sadd.s32 1, %s849_s16 }
  0x10   : > { %s1100_s22 = scalar_select %p930_p10, 1, 0 }
  0x11   : > { %p658_p11 = pneg %p930_p10  ;;  %p945_p0 = pnand %p667_p12, %p71_p5 }
  0x12   : > { %p950_p1 = scmp.ge.s32.totalorder %s26_s27, 2  ;;  %s741_s4 = scalar_lea.hbm %s1088_s0, 256 }
  0x13   : > { %p941_p13 = pnand %p658_p11, %p914_p3  ;;  %p742_p2 = scmp.ne.s32.totalorder %s1088_s0, %s741_s4 }
  0x14   : > { %s1102_s26 = scalar_select %p945_p0, 1, 0 }
  0x15   : > { %s1103_s28 = scalar_select %p950_p1, 1, 0 }
  0x16   : > { %p743_p4 = pneg %p941_p13  ;;  %p748_p9 = scmp.lt.u32.totalorder %s741_s4, %s1088_s0 }
  0x18   : > { %p744_p6 = pnand %p743_p4, %p742_p2 }
  0x1a   : > { %p745_p5 = pneg %p744_p6 }
  0x1c   : > { %p750_p11 = pnand %p748_p9, %p745_p5 }
  0x1e   : > { %753 = shalt.err (!%p750_p11)
}
  0x1f   : > { %s754_s9 = scalar_lea.vmem %s934_s24, 256  ;;  %p762_p3 = scmp.lt.s32.totalorder %s934_s24, %s934_s24 }
  0x20   : > { %p755_p12 = scmp.ne.s32.totalorder %s934_s24, %s754_s9  ;;  %p763_p10 = scmp.lt.s32.totalorder %s754_s9, %s754_s9 }
  0x22   : > { %p757_p8 = pnand %p755_p12, %p743_p4  ;;  %p764_p0 = por %p763_p10, %p762_p3 }
  0x24   : > { %p758_p7 = pneg %p757_p8 }
  0x26   : > { %p765_p1 = pnand %p764_p0, %p758_p7 }
  0x28   : > { %768 = shalt.err (!%p765_p1)
}
  0x29   : > { %s856_s10 = smov 128   ;;  %s857_s11 = smov 8  }
  0x2a   : > { %661 = dma.hbm_to_vmem [thread:$0]  (!%p941_p13), %s1088_s0, 256, %s934_s24, [#allocation3], %s856_s10, %s856_s10, %s857_s11  }
  0x2b   : > { %s62_s23 = sadd.s32 1, %s841_s14  ;;  %p1104_p3 = scmp.ne.s32.totalorder %s1103_s28, 0 }
  0x2c   : > { %s170_s29 = sand.u32 1, %s841_s14   ;;  %s593_s30 = sshll.u32 %s849_s16, 6 }
  0x2d   : > { %s1116_s27 = smov (%p1104_p3, %s26_s27), 0  ;;  %s592_s5 = sshll.u32 %s170_s29, 7 }
  0x2e   : > { %s59_s4 = ssub.s32 %s849_s16, %s1116_s27  ;;  %s989_s7 = scalar_lea.hbm %s1089_s1, %s593_s30 }
  0x2f   : > { %p60_p7 = scmp.eq.s32.totalorder %s59_s4, 0  ;;  %s174_s28 = scalar_lea.vmem [#allocation4], %s592_s5 }
  0x30   : > { %s180_s8 = sshll.u32 %s174_s28, 4  ;;  %s996_s9 = scalar_lea.sflag [#allocation5], %s170_s29  ;;  %s994_s8 = int_to_ptr.vmem [resolvable:$true] %s180_s8 }
  0x31   : > { %s992_s24 = scalar_select %p60_p7, %s841_s14, %s62_s23  }
  0x32   : > { %s769_s11 = scalar_lea.hbm %s989_s7, 2048  ;;  %p1105_p10 = scmp.ne.s32.totalorder %s1102_s26, 0 }
  0x33   : > { %p770_p8 = scmp.ne.s32.totalorder %s989_s7, %s769_s11  ;;  %s774_s30 = scalar_lea.hbm %s1089_s1, 4096 }
  0x34   : > { %p771_p13 = pneg %p1105_p10  ;;  %p775_p2 = scmp.lt.u32.totalorder %s989_s7, %s1089_s1 }
  0x35   : > { %p776_p4 = scmp.lt.u32.totalorder %s774_s30, %s769_s11  ;;  %p778_p5 = scmp.lt.u32.totalorder %s769_s11, %s989_s7 }
  0x36   : > { %p772_p0 = pnand %p771_p13, %p770_p8 }
  0x37   : > { %p777_p6 = por %p776_p4, %p775_p2 }
  0x38   : > { %p773_p1 = pneg %p772_p0 }
  0x39   : > { %p779_p9 = por %p778_p5, %p777_p6 }
  0x3b   : > { %p780_p11 = pnand %p779_p9, %p773_p1 }
  0x3d   : > { %783 = shalt.err (!%p780_p11)
}
  0x3e   : > { %s784_s29 = scalar_lea.vmem %s994_s8, 2048  ;;  %s858_s5 = smov [#allocation4]  }
  0x3f   : > { %p785_p12 = scmp.ne.s32.totalorder %s994_s8, %s784_s29  ;;  %s789_s6 = sshll.u32 %s858_s5, 4  ;;  %s790_s6 = int_to_ptr.vmem [resolvable:$false] %s789_s6 }
  0x40   : > { %s791_s25 = scalar_lea.vmem %s790_s6, 4096  ;;  %p792_p8 = scmp.lt.s32.totalorder %s994_s8, %s790_s6 }
  0x41   : > { %p787_p3 = pnand %p785_p12, %p771_p13  ;;  %p793_p0 = scmp.lt.s32.totalorder %s791_s25, %s784_s29 }
  0x43   : > { %p788_p7 = pneg %p787_p3  ;;  %p794_p2 = por %p793_p0, %p792_p8 }
  0x45   : > { %p795_p4 = pnand %p794_p2, %p788_p7 }
  0x47   : > { %798 = shalt.err (!%p795_p4)
}
  0x48   : > { %s859_s28 = smov 64   ;;  %s860_s11 = smov 4  }
  0x49   : > { %665 = dma.hbm_to_vmem [thread:$0]  (!%p1105_p10), %s989_s7, 2048, %s994_s8, %s996_s9, %s856_s10, %s859_s28, %s860_s11  }
  0x4a   : > { %p1106_p13 = scmp.ne.s32.totalorder %s1100_s22, 0 }
  0x4b   : > { %p1107_p1 = scmp.ne.s32.totalorder (!%p1106_p13), %s1097_s19, 0 }
  0x4c   : > { %198 = sbr.rel (%p1106_p13) target bundleno = 351 (0x15f), region = 32 }
  0x53   : > { %824 = dma.done.wait (%p1107_p1), [#allocation3], 256  }
  0x54   : > { %826 = vsyncadd (%p1107_p1), [#allocation3], 4294967040  ;;  %s1032_s12 = sand.u32 1, %s837_s13   ;;  %p1108_p10 = scmp.ne.s32.totalorder %s1098_s20, 0 }
  0x55   : > { %s596_s18 = sshll.u32 %s1032_s12, 7  ;;  %s205_s30 = scalar_lea.sflag [#allocation5], %s1032_s12 }
  0x56   : > { %s1036_s26 = scalar_lea.vmem [#allocation4], %s596_s18 }
  0x57   : > { %828 = dma.done.wait (%p1108_p10), %s205_s30, 2048  }
  0x58   : > { %830 = vsyncadd (%p1108_p10), %s205_s30, 4294965248  ;;  %v722_v0 = vld [vmem:[%s1036_s26 + $0x40] sm:$0xff]   ;;  %v724_v2 = vld [vmem:[%s1036_s26 + $0x48] sm:$0xff]   ;;  %p234_p6 = scmp.lt.s32.totalorder %s845_s15, 1  ;;  %s597_s7 = sshll.u32 %s1032_s12, 3 }
  0x59   : > { %v723_v1 = vld [vmem:[%s1036_s26] sm:$0xff]   ;;  %630 = vmatprep.subr.bf16.mxu0 %v722_v0  ;;  %v725_v3 = vld [vmem:[%s1036_s26 + $0x8] sm:$0xff]   ;;  %v726_v4 = vld [vmem:[%s1036_s26 + $0x50] sm:$0xff]   ;;  %s232_s8 = scalar_lea.vmem [#allocation6], %s597_s7  ;;  %p1109_p5 = scmp.ne.s32.totalorder %s1099_s21, 0 }
  0x5a   : > { %631 = vmatpush3.bf16.msra.mxu0 %v723_v1  ;;  %v727_v5 = vld [vmem:[%s1036_s26 + $0x10] sm:$0xff]   ;;  %v728_v6 = vld [vmem:[%s1036_s26 + $0x58] sm:$0xff]   ;;  %v730_v8 = vld [vmem:[%s1036_s26 + $0x60] sm:$0xff]   ;;  %s235_s19 = scalar_select %p234_p6, %s845_s15, 1 }
  0x5b   : > { %632 = vmatprep.subr.bf16.mxu0 %v724_v2  ;;  %v729_v7 = vld [vmem:[%s1036_s26 + $0x18] sm:$0xff]   ;;  %v731_v9 = vld [vmem:[%s1036_s26 + $0x20] sm:$0xff]   ;;  %v732_v10 = vld [vmem:[%s1036_s26 + $0x68] sm:$0xff]   ;;  %s620_s9 = sshll.u32 (%p1109_p5), %s845_s15, 2 }
  0x5c   : > { %v740_v11 = vld [vmem:[#allocation2 + $0x4] ss:$8 sps:$4 sm:$0xff]   ;;  %v733_v12 = vld [vmem:[%s1036_s26 + $0x28] sm:$0xff]   ;;  %v738_v17 = vld [vmem:[#allocation2] ss:$8 sps:$4 sm:$0xff]   ;;  %s236_s10 = scalar_lea.vmem %s1090_s2, %s235_s19  ;;  %s448_s29 = scalar_lea.vmem (%p1109_p5), %s1091_s3, %s620_s9 }
  0x5d   : > { %418 = vmatprep.mubr.bf16.mxu0 %v740_v11  ;;  %v734_v13 = vld [vmem:[%s1036_s26 + $0x70] sm:$0xff]   ;;  %v736_v15 = vld [vmem:[%s1036_s26 + $0x78] sm:$0xff]  }
  0x5e   : > { %633 = vmatpush3.bf16.msra.mxu0 %v725_v3  ;;  %v735_v14 = vld [vmem:[%s1036_s26 + $0x30] sm:$0xff]   ;;  %v737_v16 = vld [vmem:[%s1036_s26 + $0x38] sm:$0xff]  }
  0x5f   : > { %634 = vmatprep.subr.bf16.mxu0 %v726_v4  ;;  %v598_v22 = vld [vmem:[%s236_s10] ss:$0 sm:$0xff] }
  0x62   : > { %635 = vmatpush3.bf16.msra.mxu0 %v727_v5 }
  0x63   : > { %636 = vmatprep.subr.bf16.mxu0 %v728_v6 }
  0x66   : > { %637 = vmatpush3.bf16.msra.mxu0 %v729_v7 }
  0x67   : > { %638 = vmatprep.subr.bf16.mxu0 %v730_v8 }
  0x6a   : > { %639 = vmatpush3.bf16.msra.mxu0 %v731_v9 }
  0x6b   : > { %640 = vmatprep.subr.bf16.mxu0 %v732_v10 }
  0x6e   : > { %641 = vmatpush3.bf16.msra.mxu0 %v733_v12 }
  0x6f   : > { %642 = vmatprep.subr.bf16.mxu0 %v734_v13 }
  0x72   : > { %643 = vmatpush3.bf16.msra.mxu0 %v735_v14 }
  0x73   : > { %644 = vmatprep.subr.bf16.mxu0 %v736_v15 }
  0x76   : > { %645 = vmatpush3.bf16.msra.mxu0 %v737_v16 }
  0x79   : > { %419 = vmatmul.mubr.bf16.vlgmr.msra.gmra.mrb[0].mxu0 %v738_v17 }
 0x14c   : > { %v646_v18 = vpop.f32.mrb[0].mxu0 }
 0x14d   : > { %v647_v19 = vpop.f32.mrb[1].mxu0 }
 0x14e   : > { %v648_v20 = vadd.f32 %v647_v19, %v646_v18  ;;  %v649_v21 = vpop.f32.mrb[2].mxu0 }
 0x14f   : > { %v650_v23 = vpop.f32.mrb[3].mxu0 }
 0x150   : > { %v651_v24 = vadd.f32 %v650_v23, %v649_v21  ;;  %v421_v25 = vadd.f32 %v648_v20, %v598_v22  ;;  %443 = sbr.rel (!%p1109_p5) target bundleno = 351 (0x15f), region = 44 }
 0x152   : > { %v424_v26 = vadd.f32 %v651_v24, %v598_v22 }
 0x154   : > { %v628_v27 = vpack.c.bf16 %v424_v26, %v421_v25 }
 0x156   : > { %629 = vst [vmem:[%s232_s8] sm:$0xff] %v628_v27  }
 0x15d   : > { %v464_v28 = vld [vmem:[%s232_s8] sm:$0xf]  ;;  %v466_v29 = vld [vmem:[%s232_s8 + $0x4] sm:$0xf] }
 0x15e   : > { %465 = vst [vmem:[%s448_s29] sm:$0xf] %v464_v28  ;;  %467 = vst [vmem:[%s448_s29 + $0x8] sm:$0xf] %v466_v29 }
 0x15f PF: > { %s17_s17 = sadd.s32 1, %s853_s17   ;;  %s1110_s12 = smov %s837_s13 }
 0x160   : > { %p14_p9 = scmp.ge.s32.totalorder %s17_s17, 4   ;;  %s1111_s13 = smov %s841_s14 }
 0x161   : > { %s1112_s14 = smov %s992_s24  ;;  %s1113_s15 = smov %s849_s16 }
 0x162   : > { %s1114_s16 = smov %s1116_s27  ;;  %16 = sbr.rel (!%p14_p9) target bundleno = 5 (0x5), region = 122 }
 0x169   :  { %504 = vsyncpa [#allocation3], 1 }
 0x16a   :  { %506 = vsyncpa [#allocation3 + $0x1], 1 }
 0x16b   :  { %507 = vsyncpa [#allocation5], 1 }
 0x16c   :  { %509 = vsyncpa [#allocation5 + $0x1], 1 }

</bundles_post_ra>
